<compile_context>
chip_gen: v7x
topology: tpu7x:2x2x1
jax: 0.10.0
libtpu: 0.0.40
codegen_flags: <defaults>
</compile_context>

<pallas_src>
import functools

import jax
import jax.numpy as jnp
from jax.experimental import pallas as pl
from jax.experimental.pallas import tpu as pltpu


SMOOTH = 1e-6
_LANES = 128   # lane width
_K = 4         # independent accumulator chains in the per-tile fold


def _round_up(x, m):
    return ((x + m - 1) // m) * m


def _input_vmem_budget_bytes():
    """Total budget for the double-buffered input tiles (both operands)."""
    try:
        kind = jax.devices()[0].device_kind.lower()
    except Exception:  # pragma: no cover - defensive
        kind = ""
    if any(s in kind for s in ("v7", "v6", "v5p", "v4")):
        return 16 * 1024 * 1024   # 32 MiB scoped default -> 16 MiB of inputs
    return 8 * 1024 * 1024        # v5e / unknown: 16 MiB scoped default


def _pick_tile_rows(x_dtype, t_dtype, rows):
    bytes_per_row = _LANES * (jnp.dtype(x_dtype).itemsize + jnp.dtype(t_dtype).itemsize)
    tile_rows = _input_vmem_budget_bytes() // (2 * bytes_per_row)  # 2 = double buffer
    tile_rows = max(32, (tile_rows // 32) * 32)       # 32 sublanes: ok for f32..int8
    tile_rows = min(tile_rows, _round_up(rows, 32))   # don't over-allocate tiny inputs
    return tile_rows


def _fold(v, tile_rows):
    """(tile_rows, 128) -> (8, 128) via sublane-aligned VPU adds, 4 indep chains."""
    groups = tile_rows // 8
    v4 = v.reshape(groups // _K, _K, 8, _LANES)
    return jnp.sum(jnp.sum(v4, axis=0), axis=0)


def _dice_partial_kernel(x_ref, t_ref, out_ref, *, total_rows, tile_rows,
                         needs_mask, num_tiles):
    # Load at native width, upcast in-register so bf16/int8 inputs only cost
    # their native HBM bytes while accumulation stays f32.
    x = x_ref[...].astype(jnp.float32)
    t = t_ref[...].astype(jnp.float32)

    def fold_store(xv, tv):
        out_ref[0, 0, :, :] = _fold(xv * tv, tile_rows)   # -> intersection
        out_ref[0, 1, :, :] = _fold(xv + tv, tile_rows)   # -> sum(x) + sum(t)

    def masked_fold_store():
        # Last tile overhangs the real row count: zero OOB rows *before* any
        # arithmetic so garbage (incl. NaN) cannot reach the sums.
        base = pl.program_id(0) * tile_rows
        row_ids = base + jax.lax.broadcasted_iota(jnp.int32, (tile_rows, _LANES), 0)
        valid = row_ids < total_rows
        fold_store(jnp.where(valid, x, 0.0), jnp.where(valid, t, 0.0))

    if not needs_mask:
        fold_store(x, t)
    elif num_tiles == 1:
        masked_fold_store()
    else:
        last = num_tiles - 1

        @pl.when(pl.program_id(0) != last)
        def _():
            fold_store(x, t)

        @pl.when(pl.program_id(0) == last)
        def _():
            masked_fold_store()


def dice_loss(inputs, targets, smooth=SMOOTH):
    """Matches DiceLoss.forward: flatten, reduce, 1 - (2*I + s)/(Sx + St + s)."""
    x = jnp.ravel(inputs)
    t = jnp.ravel(targets)
    # Keep streams narrow: bool -> int8 (1 byte); floats/ints stay native and
    # are upcast to f32 inside the kernel.
    if x.dtype == jnp.bool_:
        x = x.astype(jnp.int8)
    if t.dtype == jnp.bool_:
        t = t.astype(jnp.int8)

    n = x.shape[0]
    n_main = (n // _LANES) * _LANES
    rows = n_main // _LANES

    # <128-element ragged tail: reduce with plain jnp instead of padding the
    # whole stream (jnp.pad would rematerialize both inputs in HBM).
    inter_tail = jnp.float32(0.0)
    denom_tail = jnp.float32(0.0)
    if n_main != n:
        x_tail = x[n_main:].astype(jnp.float32)
        t_tail = t[n_main:].astype(jnp.float32)
        inter_tail = jnp.sum(x_tail * t_tail)
        denom_tail = jnp.sum(x_tail) + jnp.sum(t_tail)

    if rows == 0:
        inter = inter_tail
        denom = denom_tail
    else:
        x2 = x[:n_main].reshape(rows, _LANES)
        t2 = t[:n_main].reshape(rows, _LANES)

        tile_rows = _pick_tile_rows(x2.dtype, t2.dtype, rows)
        num_tiles = pl.cdiv(rows, tile_rows)
        needs_mask = (rows % tile_rows) != 0

        kernel = functools.partial(
            _dice_partial_kernel,
            total_rows=rows,
            tile_rows=tile_rows,
            needs_mask=needs_mask,
            num_tiles=num_tiles,
        )

        partials = pl.pallas_call(
            kernel,
            out_shape=jax.ShapeDtypeStruct((num_tiles, 2, 8, _LANES), jnp.float32),
            grid_spec=pltpu.PrefetchScalarGridSpec(
                num_scalar_prefetch=0,
                grid=(num_tiles,),
                in_specs=[
                    pl.BlockSpec((tile_rows, _LANES), lambda i: (i, 0)),
                    pl.BlockSpec((tile_rows, _LANES), lambda i: (i, 0)),
                ],
                out_specs=pl.BlockSpec((1, 2, 8, _LANES), lambda i: (i, 0, 0, 0)),
            ),
            compiler_params=pltpu.CompilerParams(
                # Independent tiles -> megacore sharding across both TCs on v7x.
                dimension_semantics=("parallel",),
            ),
        )(x2, t2)

        inter = jnp.sum(partials[:, 0]) + inter_tail
        denom = jnp.sum(partials[:, 1]) + denom_tail

    dice = (2.0 * inter + smooth) / (denom + smooth)
    return 1.0 - dice


def _reference(x, t, smooth=SMOOTH):
    xf = jnp.ravel(x).astype(jnp.float32)
    tf = jnp.ravel(t).astype(jnp.float32)
    inter = jnp.sum(xf * tf)
    return 1.0 - (2.0 * inter + smooth) / (jnp.sum(xf) + jnp.sum(tf) + smooth)


if __name__ == "__main__":
    key = jax.random.PRNGKey(0)
    k1, k2, k3, k4 = jax.random.split(key, 4)

    # Case 1: lane-aligned NCHW f32 (sigmoid preds, binary targets).
    x1 = jax.nn.sigmoid(jax.random.normal(k1, (2, 4, 16, 16), dtype=jnp.float32))
    t1 = (jax.random.uniform(k2, (2, 4, 16, 16)) > 0.5).astype(jnp.float32)
    l1 = jax.block_until_ready(dice_loss(x1, t1))
    r1 = _reference(x1, t1)
    assert jnp.allclose(l1, r1, rtol=1e-5, atol=1e-6), (l1, r1)

    # Case 2: unaligned NCDHW shape -> exercises prefix-slice + jnp tail path.
    x2 = jax.nn.sigmoid(jax.random.normal(k3, (2, 3, 7, 16, 13), dtype=jnp.float32))
    t2 = (jax.random.uniform(k4, (2, 3, 7, 16, 13)) > 0.5).astype(jnp.float32)
    l2 = jax.block_until_ready(dice_loss(x2, t2))
    r2 = _reference(x2, t2)
    assert jnp.allclose(l2, r2, rtol=1e-5, atol=1e-6), (l2, r2)

    # Case 3: bf16 inputs -> DMA'd at half width, upcast to f32 in-kernel.
    x3 = x1.astype(jnp.bfloat16)
    t3 = t1.astype(jnp.bfloat16)
    l3 = jax.block_until_ready(dice_loss(x3, t3))
    r3 = _reference(x3, t3)
    assert jnp.allclose(l3, r3, rtol=1e-4, atol=1e-5), (l3, r3)

    # Case 4: bool targets -> streamed as int8 (native width), upcast in-kernel.
    t4 = jax.random.uniform(k2, (2, 4, 16, 16)) > 0.5
    l4 = jax.block_until_ready(dice_loss(x1, t4))
    r4 = _reference(x1, t4.astype(jnp.float32))
    assert jnp.allclose(l4, r4, rtol=1e-5, atol=1e-6), (l4, r4)

    print("KERNEL_OK")
</pallas_src>

<mosaic_0001>
module attributes {stable_mosaic.version = 11 : i64} {
  func.func @_dice_partial_kernel(%arg0: i32, %arg1: memref<32x128xf32, #tpu.memory_space<vmem>>, %arg2: memref<32x128xf32, #tpu.memory_space<vmem>>, %arg3: memref<1x2x8x128xf32, #tpu.memory_space<vmem>>) attributes {dimension_semantics = [#tpu.dimension_semantics<parallel>], iteration_bounds = array<i64: 1>, scalar_prefetch = 0 : i64, scratch_operands = 0 : i64, tpu.core_type = #tpu.core_type<tc>, window_params = [{transform_indices = @transform_0, window_bounds = array<i64: 32, 128>}, {transform_indices = @transform_1, window_bounds = array<i64: 32, 128>}, {transform_indices = @transform_2, window_bounds = array<i64: 1, 2, 8, 128>}]} {
    %c0 = arith.constant 0 : index
    %c0_0 = arith.constant 0 : index
    %0 = vector.load %arg1[%c0, %c0_0] : memref<32x128xf32, #tpu.memory_space<vmem>>, vector<32x128xf32>
    %c0_1 = arith.constant 0 : index
    %c0_2 = arith.constant 0 : index
    %1 = vector.load %arg2[%c0_1, %c0_2] : memref<32x128xf32, #tpu.memory_space<vmem>>, vector<32x128xf32>
    %c32_i32 = arith.constant 32 : i32
    %2 = arith.muli %arg0, %c32_i32 : i32
    %3 = tpu.iota {dimensions = array<i32: 0>} : vector<32x128xi32>
    %4 = vector.broadcast %2 : i32 to vector<32x128xi32>
    %5 = arith.addi %4, %3 : vector<32x128xi32>
    %c16_i32 = arith.constant 16 : i32
    %6 = vector.broadcast %c16_i32 : i32 to vector<32x128xi32>
    %7 = arith.cmpi slt, %5, %6 : vector<32x128xi32>
    %cst = arith.constant 0.000000e+00 : f32
    %8 = vector.broadcast %cst : f32 to vector<32x128xf32>
    %9 = arith.select %7, %0, %8 : vector<32x128xi1>, vector<32x128xf32>
    %cst_3 = arith.constant 0.000000e+00 : f32
    %10 = vector.broadcast %cst_3 : f32 to vector<32x128xf32>
    %11 = arith.select %7, %1, %10 : vector<32x128xi1>, vector<32x128xf32>
    %12 = arith.mulf %9, %11 : vector<32x128xf32>
    %13 = vector.shape_cast %12 : vector<32x128xf32> to vector<1x4x8x128xf32>
    %cst_4 = arith.constant dense<0.000000e+00> : vector<4x8x128xf32>
    %14 = vector.multi_reduction <add>, %13, %cst_4 [0] : vector<1x4x8x128xf32> to vector<4x8x128xf32>
    %cst_5 = arith.constant dense<0.000000e+00> : vector<8x128xf32>
    %15 = vector.multi_reduction <add>, %14, %cst_5 [0] : vector<4x8x128xf32> to vector<8x128xf32>
    %c0_6 = arith.constant 0 : index
    %c0_7 = arith.constant 0 : index
    %c0_8 = arith.constant 0 : index
    %c0_9 = arith.constant 0 : index
    %16 = vector.load %arg3[%c0_6, %c0_7, %c0_8, %c0_9] : memref<1x2x8x128xf32, #tpu.memory_space<vmem>>, vector<1x1x8x128xf32>
    %17 = vector.shape_cast %16 : vector<1x1x8x128xf32> to vector<8x128xf32>
    %18 = vector.shape_cast %15 : vector<8x128xf32> to vector<1x1x8x128xf32>
    tpu.vector_store %arg3[%c0_6, %c0_7, %c0_8, %c0_9], %18 {strides = array<i32>} : memref<1x2x8x128xf32, #tpu.memory_space<vmem>>, vector<1x1x8x128xf32>,
    %19 = arith.addf %9, %11 : vector<32x128xf32>
    %20 = vector.shape_cast %19 : vector<32x128xf32> to vector<1x4x8x128xf32>
    %cst_10 = arith.constant dense<0.000000e+00> : vector<4x8x128xf32>
    %21 = vector.multi_reduction <add>, %20, %cst_10 [0] : vector<1x4x8x128xf32> to vector<4x8x128xf32>
    %cst_11 = arith.constant dense<0.000000e+00> : vector<8x128xf32>
    %22 = vector.multi_reduction <add>, %21, %cst_11 [0] : vector<4x8x128xf32> to vector<8x128xf32>
    %c0_12 = arith.constant 0 : index
    %c1 = arith.constant 1 : index
    %c0_13 = arith.constant 0 : index
    %c0_14 = arith.constant 0 : index
    %23 = vector.load %arg3[%c0_12, %c1, %c0_13, %c0_14] : memref<1x2x8x128xf32, #tpu.memory_space<vmem>>, vector<1x1x8x128xf32>
    %24 = vector.shape_cast %23 : vector<1x1x8x128xf32> to vector<8x128xf32>
    %25 = vector.shape_cast %22 : vector<8x128xf32> to vector<1x1x8x128xf32>
    tpu.vector_store %arg3[%c0_12, %c1, %c0_13, %c0_14], %25 {strides = array<i32>} : memref<1x2x8x128xf32, #tpu.memory_space<vmem>>, vector<1x1x8x128xf32>,
    return
  }
  func.func @transform_0(%arg0: i32) -> (i32, i32) {
    %c0_i32 = arith.constant 0 : i32
    %c0_i32_0 = arith.constant 0 : i32
    return %arg0, %c0_i32 : i32, i32
  }
  func.func @transform_1(%arg0: i32) -> (i32, i32) {
    %c0_i32 = arith.constant 0 : i32
    %c0_i32_0 = arith.constant 0 : i32
    return %arg0, %c0_i32 : i32, i32
  }
  func.func @transform_2(%arg0: i32) -> (i32, i32, i32, i32) {
    %c0_i32 = arith.constant 0 : i32
    %c0_i32_0 = arith.constant 0 : i32
    %c0_i32_1 = arith.constant 0 : i32
    %c0_i32_2 = arith.constant 0 : i32
    return %arg0, %c0_i32, %c0_i32_0, %c0_i32_1 : i32, i32, i32, i32
  }
}

</mosaic_0001>

<bundles_post_ra>
// kernel: tpu_custom_call.1
= control target key start
LH: loop header
LB: loop body
LE: loop exit
PB: predicated region body
PF: predicated region fallthrough
CT: control target
= control target key end

     0   :  { %7 = vsyncpa [#allocation3], 0  ;;  %s256_s0 = inlined_call_operand.hbm [shape: f32[16,128], index: 0, kind: input, shape index: {}]   ;;  %s257_s1 = inlined_call_operand.hbm [shape: f32[16,128], index: 1, kind: input, shape index: {}]   ;;  %s258_s2 = inlined_call_operand.hbm [shape: f32[1,2,8,128], index: 2, kind: output, shape index: {}]  }
   0x1   :  { %8 = vsyncpa [#allocation6], 0 }
   0x2   :  { %9 = vsyncpa [#allocation4], 0 }
   0x3   :  { %14 = vsyncadd [#allocation3], 256  ;;  %s191_s9 = smov [#allocation2]   ;;  %s119_s13 = scalar_lea.hbm %s256_s0, 256 }
   0x4   :  { %s15_s10 = sshll.u32 %s191_s9, 4  ;;  %p120_p0 = scmp.ne.s32.totalorder %s256_s0, %s119_s13  ;;  %s16_s10 = int_to_ptr.vmem [resolvable:$true] %s15_s10 }
   0x5   :  { %p123_p1 = scmp.lt.u32.totalorder %s119_s13, %s256_s0 }
   0x7   :  { %p125_p2 = pnand %p123_p1, %p120_p0 }
   0x9   :  { %128 = shalt.err (!%p125_p2)
}
   0xa   :  { %s129_s18 = scalar_lea.vmem %s16_s10, 256  ;;  %s133_s19 = scalar_lea.vmem %s16_s10, 512 }
   0xb   :  { %p130_p3 = scmp.ne.s32.totalorder %s16_s10, %s129_s18  ;;  %p134_p4 = scmp.lt.s32.totalorder %s16_s10, %s16_s10 }
   0xc   :  { %p135_p5 = scmp.lt.s32.totalorder %s133_s19, %s129_s18 }
   0xe   :  { %p136_p6 = por %p135_p5, %p134_p4 }
  0x10   :  { %p137_p7 = pnand %p136_p6, %p130_p3 }
  0x12   :  { %140 = shalt.err (!%p137_p7)
}
  0x13   :  { %s192_s20 = smov 128   ;;  %s193_s21 = smov 8  }
  0x14   :  { %21 = dma.hbm_to_vmem [thread:$0]  %s256_s0, 256, %s16_s10, [#allocation3], %s192_s20, %s192_s20, %s193_s21  }
  0x15   :  { %26 = vsyncadd [#allocation6], 256  ;;  %s194_s24 = smov [#allocation5]   ;;  %s141_s28 = scalar_lea.hbm %s257_s1, 256 }
  0x16   :  { %s27_s25 = sshll.u32 %s194_s24, 4  ;;  %p142_p8 = scmp.ne.s32.totalorder %s257_s1, %s141_s28  ;;  %s28_s25 = int_to_ptr.vmem [resolvable:$true] %s27_s25 }
  0x17   :  { %p145_p9 = scmp.lt.u32.totalorder %s141_s28, %s257_s1 }
  0x19   :  { %p147_p10 = pnand %p145_p9, %p142_p8 }
  0x1b   :  { %150 = shalt.err (!%p147_p10)
}
  0x1c   :  { %s151_s5 = scalar_lea.vmem %s28_s25, 256  ;;  %s155_s0 = scalar_lea.vmem %s28_s25, 512 }
  0x1d   :  { %p152_p11 = scmp.ne.s32.totalorder %s28_s25, %s151_s5  ;;  %p156_p12 = scmp.lt.s32.totalorder %s28_s25, %s28_s25 }
  0x1e   :  { %p157_p13 = scmp.lt.s32.totalorder %s155_s0, %s151_s5 }
  0x20   :  { %p158_p0 = por %p157_p13, %p156_p12 }
  0x22   :  { %p159_p1 = pnand %p158_p0, %p152_p11 }
  0x24   :  { %162 = shalt.err (!%p159_p1)
}
  0x25   :  { %33 = dma.hbm_to_vmem [thread:$0]  %s257_s1, 256, %s28_s25, [#allocation6], %s192_s20, %s192_s20, %s193_s21  }
  0x26   :  { %185 = dma.done.wait [#allocation3], 512  }
  0x27   :  { %186 = vsyncadd [#allocation3], 4294966784 }
  0x28   :  { %187 = dma.done.wait [#allocation6], 512  }
  0x29   :  { %188 = vsyncadd [#allocation6], 4294966784  ;;  %v40_v0 = vld [vmem:[#allocation2] sm:$0xff]  ;;  %v41_v1 = vld [vmem:[#allocation2 + $0x8] sm:$0xff]  ;;  %s195_s8 = smov [#allocation7]  }
  0x2a   :  { %v44_v2 = vld [vmem:[#allocation5] sm:$0xff]  ;;  %v45_v3 = vld [vmem:[#allocation5 + $0x8] sm:$0xff]  ;;  %s101_s9 = sshll.u32 %s195_s8, 4  ;;  %s102_s9 = int_to_ptr.vmem [resolvable:$true] %s101_s9 }
  0x2b   :  { %v71_v4 = vmul.f32 %v44_v2, %v40_v0  ;;  %v83_v5 = vadd.f32 %v44_v2, %v40_v0  ;;  %v72_v6 = vmul.f32 %v45_v3, %v41_v1  ;;  %v84_v7 = vadd.f32 %v45_v3, %v41_v1  ;;  %s163_s1 = scalar_lea.vmem %s102_s9, 256  ;;  %p168_p3 = scmp.lt.s32.totalorder %s102_s9, %s102_s9 }
  0x2c   :  { %p164_p2 = scmp.ne.s32.totalorder %s102_s9, %s163_s1  ;;  %p169_p4 = scmp.lt.s32.totalorder %s163_s1, %s163_s1 }
  0x2d   :  { %v79_v8 = vadd.f32 %v72_v6, %v71_v4  ;;  %v91_v9 = vadd.f32 %v84_v7, %v83_v5 }
  0x2e   :  { %p170_p5 = por %p169_p4, %p168_p3 }
  0x2f   :  { %82 = vst [vmem:[#allocation7] sm:$0xff] %v79_v8  ;;  %95 = vst [vmem:[#allocation7 + $0x8] sm:$0xff] %v91_v9 }
  0x30   :  { %p171_p6 = pnand %p170_p5, %p164_p2 }
  0x32   :  { %174 = shalt.err (!%p171_p6)
}
  0x33   :  { %s175_s12 = scalar_lea.hbm %s258_s2, 256 }
  0x34   :  { %p176_p7 = scmp.ne.s32.totalorder %s258_s2, %s175_s12  ;;  %p179_p8 = scmp.lt.u32.totalorder %s175_s12, %s258_s2 }
  0x36   :  { %p181_p9 = pnand %p179_p8, %p176_p7 }
  0x38   :  { %184 = shalt.err (!%p181_p9)
}
  0x39   :  { %107 = dma.vmem_to_hbm [thread:$0]  %s102_s9, 256, %s258_s2, [#allocation4], %s192_s20, %s192_s20, %s193_s21  }
  0x3a   :  { %189 = dma.done.wait [#allocation4], 256  }
  0x3b   :  { %190 = vsyncadd [#allocation4], 4294967040 }
  0x3c   :  { %111 = vsyncpa [#allocation3], 1 }
  0x3d   :  { %112 = vsyncpa [#allocation6], 1 }
  0x3e   :  { %113 = vsyncpa [#allocation4], 1 }

</bundles_post_ra>
